<compile_context>
chip_gen: v7x
topology: tpu7x:2x2x1
jax: 0.10.0
libtpu: 0.0.40
codegen_flags: <defaults>
</compile_context>

<pallas_src>
import jax
import jax.numpy as jnp
from jax.experimental import pallas as pl
from jax.experimental.pallas import tpu as pltpu

INPUT_SIZE = 270
H1, H2, OUT = 128, 64, 5


def _chip_config():
    """Per-TPU-generation tiling / VMEM / precision choices."""
    try:
        kind = jax.devices()[0].device_kind.lower()
    except Exception:  # pragma: no cover - defensive; default backend is TPU
        kind = ""
    if "v5e" in kind or "v5 lite" in kind or "v5lite" in kind:
        # 16 MiB default scoped VMEM -> must raise limit; f32 MXU path is the
        # near-bottleneck -> bf16 fc1 inputs (f32 accumulation).
        return dict(max_tb=4096, vmem_limit=64 << 20, bf16_fc1=True,
                    x_buffers=2, core_multiple=1)
    if "v6" in kind:
        # 128 MiB physical VMEM: go to bigger tiles to shrink per-step tax.
        return dict(max_tb=8192, vmem_limit=80 << 20, bf16_fc1=False,
                    x_buffers=2, core_multiple=1)
    if "v7" in kind:
        # 64 MiB/TC ceiling: keep tiles <=4096; balance the grid across the
        # 2 TensorCores; deepen x buffering to cover DMA issue latency.
        return dict(max_tb=4096, vmem_limit=48 << 20, bf16_fc1=False,
                    x_buffers=3, core_multiple=2)
    # Conservative default (covers v5p / unknown).
    return dict(max_tb=4096, vmem_limit=48 << 20, bf16_fc1=False,
                x_buffers=2, core_multiple=1)


def _pick_tile(batch, max_tb, core_multiple):
    """Batch tile: exact block for small B; else balanced multiple-of-8 tiles."""
    if batch <= max_tb:
        return batch  # block dim == full array dim (always legal)
    n_tiles = -(-batch // max_tb)
    n_tiles = -(-n_tiles // core_multiple) * core_multiple  # even grid on v7x
    tb = -(-batch // n_tiles)
    tb = -(-tb // 8) * 8  # (8, 128) sublane constraint
    return tb


def _mlp_kernel(x_ref, w1_ref, b1_ref, w2_ref, b2_ref, w3_ref, b3_ref, o_ref):
    # Cast after the DMA (torch.flatten(x.float(), 1) semantics; x streams in
    # its producer dtype).  When w1 is bf16 (v5e path) fc1 runs on the bf16
    # MXU path with f32 accumulation.
    x = x_ref[...].astype(w1_ref.dtype)
    # fc1 -> relu
    h1 = jnp.dot(x, w1_ref[...], preferred_element_type=jnp.float32) + b1_ref[...]
    h1 = jnp.maximum(h1, 0.0)
    # fc2 -> tanh
    h2 = jnp.dot(h1, w2_ref[...], preferred_element_type=jnp.float32) + b2_ref[...]
    h2 = jnp.tanh(h2)
    # fc3 (OUT=5: tiny masked store; output bytes negligible vs input stream)
    o_ref[...] = jnp.dot(h2, w3_ref[...], preferred_element_type=jnp.float32) + b3_ref[...]


def lin_forward(x, params, *, max_tb=None):
    """x: any shape (B, ...) flattening to (B, INPUT_SIZE). Returns (B, 5) f32."""
    cfg = _chip_config()
    if max_tb is None:
        max_tb = cfg["max_tb"]

    w1, b1, w2, b2, w3, b3 = params
    if cfg["bf16_fc1"]:
        w1 = w1.astype(jnp.bfloat16)  # resident weight stays bf16 in VMEM

    B = x.shape[0]
    xf = x.reshape(B, -1)  # flatten(x, 1); dtype cast happens inside the kernel
    assert xf.shape[1] == INPUT_SIZE, f"expected {INPUT_SIZE} features, got {xf.shape[1]}"

    tb = _pick_tile(B, max_tb, cfg["core_multiple"])
    grid_len = pl.cdiv(B, tb)

    # x stream: auto double-buffered; optionally 3-deep on v7x.
    if cfg["x_buffers"] > 2 and grid_len >= cfg["x_buffers"]:
        x_spec = pl.BlockSpec((tb, INPUT_SIZE), lambda i: (i, 0),
                              pipeline_mode=pl.Buffered(cfg["x_buffers"]))
    else:
        x_spec = pl.BlockSpec((tb, INPUT_SIZE), lambda i: (i, 0))
    out_spec = pl.BlockSpec((tb, OUT), lambda i: (i, 0))
    # Constant block index -> weights/biases stay VMEM-resident across steps.
    resident = lambda shape: pl.BlockSpec(shape, lambda i: (0, 0))

    out = pl.pallas_call(
        _mlp_kernel,
        out_shape=jax.ShapeDtypeStruct((B, OUT), jnp.float32),
        grid=(grid_len,),
        in_specs=[
            x_spec,
            resident((INPUT_SIZE, H1)),
            resident((1, H1)),
            resident((H1, H2)),
            resident((1, H2)),
            resident((H2, OUT)),
            resident((1, OUT)),
        ],
        out_specs=out_spec,
        compiler_params=pltpu.CompilerParams(
            dimension_semantics=("parallel",),        # shard batch tiles across TCs on v7x
            vmem_limit_bytes=cfg["vmem_limit"],       # v5e default (16 MiB) is too small
        ),
    )(xf, w1, b1, w2, b2, w3, b3)
    return out


def init_params(key):
    k1, k2, k3, k4, k5, k6 = jax.random.split(key, 6)
    # deterministic synthetic init; weights stored (in, out), biases (1, out)
    w1 = jax.random.normal(k1, (INPUT_SIZE, H1), jnp.float32) * 0.05
    b1 = jax.random.normal(k2, (1, H1), jnp.float32) * 0.01
    w2 = jax.random.normal(k3, (H1, H2), jnp.float32) * 0.05
    b2 = jax.random.normal(k4, (1, H2), jnp.float32) * 0.01
    w3 = jax.random.normal(k5, (H2, OUT), jnp.float32) * 0.05
    b3 = jax.random.normal(k6, (1, OUT), jnp.float32) * 0.01
    return (w1, b1, w2, b2, w3, b3)


def _reference(x, params):
    w1, b1, w2, b2, w3, b3 = params
    xf = x.astype(jnp.float32).reshape(x.shape[0], -1)
    h1 = jnp.maximum(xf @ w1 + b1, 0.0)
    h2 = jnp.tanh(h1 @ w2 + b2)
    return h2 @ w3 + b3


if __name__ == "__main__":
    key = jax.random.PRNGKey(0)
    pkey, xkey, xkey2 = jax.random.split(key, 3)
    params = init_params(pkey)

    cfg = _chip_config()
    # bf16 fc1 (v5e) changes low-order bits; loosen tolerances there.
    tol = dict(atol=3e-2, rtol=3e-2) if cfg["bf16_fc1"] else dict(atol=1e-4, rtol=1e-4)

    # Small NCHW-like input that flattens to 270 features: (2, 3, 9, 10)
    x = jax.random.normal(xkey, (2, 3, 9, 10), jnp.float32)
    y = jax.block_until_ready(lin_forward(x, params))
    y_ref = _reference(x, params)
    assert y.shape == (2, OUT)
    assert jnp.allclose(y, y_ref, **tol)

    # Larger batch with the chip's default tiling (single or few balanced tiles).
    xb = jax.random.normal(xkey2, (4100, INPUT_SIZE), jnp.float32)
    yb = jax.block_until_ready(lin_forward(xb, params))
    yb_ref = _reference(xb, params)
    assert yb.shape == (4100, OUT)
    assert jnp.allclose(yb, yb_ref, **tol)

    # Same batch forced through a multi-step grid (exercises partial last tile
    # and the pipelined x stream regardless of chip generation).
    yb2 = jax.block_until_ready(lin_forward(xb, params, max_tb=1024))
    assert jnp.allclose(yb2, yb_ref, **tol)

    print("KERNEL_OK")
</pallas_src>

<mosaic_0001>
module attributes {stable_mosaic.version = 11 : i64} {
  func.func @_mlp_kernel(%arg0: i32, %arg1: memref<2x270xf32, #tpu.memory_space<vmem>>, %arg2: memref<270x128xf32, #tpu.memory_space<vmem>>, %arg3: memref<1x128xf32, #tpu.memory_space<vmem>>, %arg4: memref<128x64xf32, #tpu.memory_space<vmem>>, %arg5: memref<1x64xf32, #tpu.memory_space<vmem>>, %arg6: memref<64x5xf32, #tpu.memory_space<vmem>>, %arg7: memref<1x5xf32, #tpu.memory_space<vmem>>, %arg8: memref<2x5xf32, #tpu.memory_space<vmem>>) attributes {dimension_semantics = [#tpu.dimension_semantics<parallel>], iteration_bounds = array<i64: 1>, scalar_prefetch = 0 : i64, scratch_operands = 0 : i64, tpu.core_type = #tpu.core_type<tc>, window_params = [{transform_indices = @transform_0, window_bounds = array<i64: 2, 270>}, {pipeline_mode = #tpu.pipeline_mode<synchronous>, transform_indices = @transform_1, window_bounds = array<i64: 270, 128>}, {pipeline_mode = #tpu.pipeline_mode<synchronous>, transform_indices = @transform_2, window_bounds = array<i64: 1, 128>}, {pipeline_mode = #tpu.pipeline_mode<synchronous>, transform_indices = @transform_3, window_bounds = array<i64: 128, 64>}, {pipeline_mode = #tpu.pipeline_mode<synchronous>, transform_indices = @transform_4, window_bounds = array<i64: 1, 64>}, {pipeline_mode = #tpu.pipeline_mode<synchronous>, transform_indices = @transform_5, window_bounds = array<i64: 64, 5>}, {pipeline_mode = #tpu.pipeline_mode<synchronous>, transform_indices = @transform_6, window_bounds = array<i64: 1, 5>}, {transform_indices = @transform_7, window_bounds = array<i64: 2, 5>}]} {
    %c0 = arith.constant 0 : index
    %c0_0 = arith.constant 0 : index
    %0 = vector.load %arg1[%c0, %c0_0] : memref<2x270xf32, #tpu.memory_space<vmem>>, vector<2x270xf32>
    %c0_1 = arith.constant 0 : index
    %c0_2 = arith.constant 0 : index
    %1 = vector.load %arg2[%c0_1, %c0_2] : memref<270x128xf32, #tpu.memory_space<vmem>>, vector<270x128xf32>
    %cst = arith.constant dense<0.000000e+00> : vector<2x128xf32>
    %2 = tpu.matmul %0, %1, %cst {dimension_numbers = #tpu.dot_dimension_numbers<[1], [0], [0], [1], [0, 0, 1, 1], [], []>} : vector<2x270xf32>, vector<270x128xf32>, vector<2x128xf32> -> vector<2x128xf32>
    %c0_3 = arith.constant 0 : index
    %c0_4 = arith.constant 0 : index
    %3 = vector.load %arg3[%c0_3, %c0_4] : memref<1x128xf32, #tpu.memory_space<vmem>>, vector<1x128xf32>
    %4 = vector.broadcast %3 : vector<1x128xf32> to vector<2x128xf32>
    %5 = arith.addf %2, %4 : vector<2x128xf32>
    %cst_5 = arith.constant 0.000000e+00 : f32
    %6 = vector.broadcast %cst_5 : f32 to vector<2x128xf32>
    %7 = arith.maximumf %5, %6 : vector<2x128xf32>
    %c0_6 = arith.constant 0 : index
    %c0_7 = arith.constant 0 : index
    %8 = vector.load %arg4[%c0_6, %c0_7] : memref<128x64xf32, #tpu.memory_space<vmem>>, vector<128x64xf32>
    %cst_8 = arith.constant dense<0.000000e+00> : vector<2x64xf32>
    %9 = tpu.matmul %7, %8, %cst_8 {dimension_numbers = #tpu.dot_dimension_numbers<[1], [0], [0], [1], [0, 0, 1, 1], [], []>} : vector<2x128xf32>, vector<128x64xf32>, vector<2x64xf32> -> vector<2x64xf32>
    %c0_9 = arith.constant 0 : index
    %c0_10 = arith.constant 0 : index
    %10 = vector.load %arg5[%c0_9, %c0_10] : memref<1x64xf32, #tpu.memory_space<vmem>>, vector<1x64xf32>
    %11 = vector.broadcast %10 : vector<1x64xf32> to vector<2x64xf32>
    %12 = arith.addf %9, %11 : vector<2x64xf32>
    %13 = math.tanh %12 : vector<2x64xf32>
    %c0_11 = arith.constant 0 : index
    %c0_12 = arith.constant 0 : index
    %14 = vector.load %arg6[%c0_11, %c0_12] : memref<64x5xf32, #tpu.memory_space<vmem>>, vector<64x5xf32>
    %cst_13 = arith.constant dense<0.000000e+00> : vector<2x5xf32>
    %15 = tpu.matmul %13, %14, %cst_13 {dimension_numbers = #tpu.dot_dimension_numbers<[1], [0], [0], [1], [0, 0, 1, 1], [], []>} : vector<2x64xf32>, vector<64x5xf32>, vector<2x5xf32> -> vector<2x5xf32>
    %c0_14 = arith.constant 0 : index
    %c0_15 = arith.constant 0 : index
    %16 = vector.load %arg7[%c0_14, %c0_15] : memref<1x5xf32, #tpu.memory_space<vmem>>, vector<1x5xf32>
    %17 = vector.broadcast %16 : vector<1x5xf32> to vector<2x5xf32>
    %18 = arith.addf %15, %17 : vector<2x5xf32>
    %c0_16 = arith.constant 0 : index
    %c0_17 = arith.constant 0 : index
    %19 = vector.load %arg8[%c0_16, %c0_17] : memref<2x5xf32, #tpu.memory_space<vmem>>, vector<2x5xf32>
    tpu.vector_store %arg8[%c0_16, %c0_17], %18 {strides = array<i32>} : memref<2x5xf32, #tpu.memory_space<vmem>>, vector<2x5xf32>,
    return
  }
  func.func @transform_0(%arg0: i32) -> (i32, i32) {
    %c0_i32 = arith.constant 0 : i32
    %c0_i32_0 = arith.constant 0 : i32
    return %arg0, %c0_i32 : i32, i32
  }
  func.func @transform_1(%arg0: i32) -> (i32, i32) {
    %c0_i32 = arith.constant 0 : i32
    %c0_i32_0 = arith.constant 0 : i32
    %c0_i32_1 = arith.constant 0 : i32
    return %c0_i32, %c0_i32_0 : i32, i32
  }
  func.func @transform_2(%arg0: i32) -> (i32, i32) {
    %c0_i32 = arith.constant 0 : i32
    %c0_i32_0 = arith.constant 0 : i32
    %c0_i32_1 = arith.constant 0 : i32
    return %c0_i32, %c0_i32_0 : i32, i32
  }
  func.func @transform_3(%arg0: i32) -> (i32, i32) {
    %c0_i32 = arith.constant 0 : i32
    %c0_i32_0 = arith.constant 0 : i32
    %c0_i32_1 = arith.constant 0 : i32
    return %c0_i32, %c0_i32_0 : i32, i32
  }
  func.func @transform_4(%arg0: i32) -> (i32, i32) {
    %c0_i32 = arith.constant 0 : i32
    %c0_i32_0 = arith.constant 0 : i32
    %c0_i32_1 = arith.constant 0 : i32
    return %c0_i32, %c0_i32_0 : i32, i32
  }
  func.func @transform_5(%arg0: i32) -> (i32, i32) {
    %c0_i32 = arith.constant 0 : i32
    %c0_i32_0 = arith.constant 0 : i32
    %c0_i32_1 = arith.constant 0 : i32
    return %c0_i32, %c0_i32_0 : i32, i32
  }
  func.func @transform_6(%arg0: i32) -> (i32, i32) {
    %c0_i32 = arith.constant 0 : i32
    %c0_i32_0 = arith.constant 0 : i32
    %c0_i32_1 = arith.constant 0 : i32
    return %c0_i32, %c0_i32_0 : i32, i32
  }
  func.func @transform_7(%arg0: i32) -> (i32, i32) {
    %c0_i32 = arith.constant 0 : i32
    %c0_i32_0 = arith.constant 0 : i32
    return %arg0, %c0_i32 : i32, i32
  }
}

</mosaic_0001>

<bundles_post_ra>
// kernel: tpu_custom_call.1
= control target key start
LH: loop header
LB: loop body
LE: loop exit
PB: predicated region body
PF: predicated region fallthrough
CT: control target
= control target key end

     0   :  { %12 = vsyncpa [#allocation3], 0  ;;  %s900_s0 = inlined_call_operand.vmem [shape: f32[2,270], index: 0, kind: input, shape index: {}]   ;;  %s901_s1 = inlined_call_operand.hbm [shape: f32[270,128], index: 1, kind: input, shape index: {}]   ;;  %s902_s2 = inlined_call_operand.vmem [shape: f32[1,128], index: 2, kind: input, shape index: {}]   ;;  %s903_s3 = inlined_call_operand.vmem [shape: f32[128,64], index: 3, kind: input, shape index: {}]   ;;  %s904_s4 = inlined_call_operand.vmem [shape: f32[1,64], index: 4, kind: input, shape index: {}]   ;;  %s905_s5 = inlined_call_operand.vmem [shape: f32[64,5], index: 5, kind: input, shape index: {}]   ;;  %s906_s6 = inlined_call_operand.vmem [shape: f32[1,5], index: 6, kind: input, shape index: {}]   ;;  %s907_s7 = inlined_call_operand.hbm [shape: f32[2,5], index: 7, kind: output, shape index: {}]  }
   0x1   :  { %13 = vsyncpa [#allocation4], 0  ;;  %s713_s24 = smov [#allocation2]   ;;  %s665_s28 = scalar_lea.hbm %s901_s1, 4352 }
   0x2   :  { %s21_s25 = sshll.u32 %s713_s24, 4  ;;  %p666_p0 = scmp.ne.s32.totalorder %s901_s1, %s665_s28  ;;  %s22_s25 = int_to_ptr.vmem [resolvable:$true] %s21_s25 }
   0x3   :  { %p669_p1 = scmp.lt.u32.totalorder %s665_s28, %s901_s1 }
   0x5   :  { %p671_p2 = pnand %p669_p1, %p666_p0 }
   0x7   :  { %674 = shalt.err (!%p671_p2)
}
   0x8   :  { %s675_s10 = scalar_lea.vmem %s22_s25, 4352  ;;  %p680_p4 = scmp.lt.s32.totalorder %s22_s25, %s22_s25 }
   0x9   :  { %p676_p3 = scmp.ne.s32.totalorder %s22_s25, %s675_s10  ;;  %p681_p5 = scmp.lt.s32.totalorder %s675_s10, %s675_s10 }
   0xb   :  { %p682_p6 = por %p681_p5, %p680_p4 }
   0xd   :  { %p683_p7 = pnand %p682_p6, %p676_p3 }
   0xf   :  { %686 = shalt.err (!%p683_p7)
}
  0x10   :  { %s714_s11 = smov 128   ;;  %s715_s12 = smov 8  }
  0x11   :  { %27 = dma.hbm_to_vmem [thread:$0]  %s901_s1, 4352, %s22_s25, [#allocation3], %s714_s11, %s714_s11, %s715_s12  }
  0x12   :  { %709 = dma.done.wait [#allocation3], 4352  }
  0x13   :  { %710 = vsyncadd [#allocation3], 4294962944  ;;  %v716_v0 = vmov 0.0|0.0   ;;  %vm717_vm0 = vmmov 0   ;;  %v718_v1 = vmov 0.0   ;;  %v88_v4 = vlaneseq  ;;  %v58_v5 = vld [vmem:[#allocation2 + $0x80] sm:$0xff] }
  0x14   :  { %613 = vmatprep.subr.bf16.mxu1 %v716_v0  ;;  %524 = vmatprep.mubr.msk.f32.mxu1 %vm717_vm0, %v718_v1  ;;  %v719_v2 = vmov 1983009808   ;;  %v59_v6 = vld [vmem:[#allocation2 + $0x88] sm:$0xff]  ;;  %v42_v7 = vld [vmem:[#allocation2] sm:$0xff]  ;;  %v60_v10 = vld [vmem:[#allocation2 + $0x90] sm:$0xff]  ;;  %vm105_vm1 = vcmask 1045504  }
  0x15   :  { %v86_v3 = vunpack.c.l.s4 %v719_v2  ;;  %v581_v8 = vpack.c.bf16 %v59_v6, %v58_v5  ;;  %v43_v9 = vld [vmem:[#allocation2 + $0x8] sm:$0xff]  ;;  %v61_v11 = vld [vmem:[#allocation2 + $0x98] sm:$0xff]  ;;  %v44_v14 = vld [vmem:[#allocation2 + $0x10] sm:$0xff]  ;;  %v89_v19 = vshrl.u32 %v88_v4, 7  ;;  %vm720_vm2 = vmmov 1  }
  0x16   :  { %v583_v12 = vpack.c.bf16 %v43_v9, %v42_v7  ;;  %v585_v13 = vpack.c.bf16 %v61_v11, %v60_v10  ;;  %v45_v15 = vld [vmem:[#allocation2 + $0x18] sm:$0xff]  ;;  %v62_v16 = vld [vmem:[#allocation2 + $0xa0] sm:$0xff]  ;;  %v63_v17 = vld [vmem:[#allocation2 + $0xa8] sm:$0xff]  ;;  %vm102_vm4 = vcmask 113664   ;;  %vm359_vm5 = vcmask 523264  }
  0x17   :  { %582 = vmatprep.subr.bf16.mxu0 %v581_v8  ;;  %v87_v18 = vunpack.c.0.s8 %v86_v3  ;;  %v587_v20 = vpack.c.bf16 %v45_v15, %v44_v14  ;;  %v589_v21 = vpack.c.bf16 %v63_v17, %v62_v16  ;;  %v46_v22 = vld [vmem:[#allocation2 + $0x20] sm:$0xff]  ;;  %v47_v23 = vld [vmem:[#allocation2 + $0x28] sm:$0xff]  ;;  %v64_v24 = vld [vmem:[#allocation2 + $0xb0] sm:$0xff]  ;;  %vm433_vm6 = vcmask 33792  }
  0x18   :  { %584 = vmatpush3.bf16.msra.mxu0 %v583_v12  ;;  %v65_v25 = vld [vmem:[#allocation2 + $0xb8] sm:$0xff]  ;;  %v591_v27 = vpack.c.bf16 %v47_v23, %v46_v22  ;;  %v48_v29 = vld [vmem:[#allocation2 + $0x30] sm:$0xff]  ;;  %vm777_vm3 = vmpackc.low %vm105_vm1, %vm720_vm2 }
  0x19   :  { %586 = vmatprep.subr.bf16.mxu0 %v585_v13  ;;  %v90_v26 = vsub.s32 %v87_v18, %v89_v19  ;;  %v593_v28 = vpack.c.bf16 %v65_v25, %v64_v24  ;;  %v49_v30 = vld [vmem:[#allocation2 + $0x38] sm:$0xff]  ;;  %v66_v32 = vld [vmem:[#allocation2 + $0xc0] sm:$0xff]  ;;  %v67_v33 = vld [vmem:[#allocation2 + $0xc8] sm:$0xff] }
  0x1a   :  { %v41_v34 = vld [vmem:[%s900_s0] sm:$0x3f]  ;;  %v75_v38 = vld [vmem:[#allocation2 + $0x108] sm:$0x3f]  ;;  %v595_v40 = vpack.c.bf16 %v49_v30, %v48_v29  ;;  %v597_v43 = vpack.c.bf16 %v67_v33, %v66_v32  ;;  %v68_v48 = vld [vmem:[#allocation2 + $0xd0] sm:$0xff] }
  0x1b   :  { %v84_v35 = vcombine.high %v41_v34, %v41_v34  ;;  %v784_v36 = vrot.slane %v41_v34, %v90_v26  ;;  %v74_v37 = vld [vmem:[#allocation2 + $0x100] sm:$0xff]  ;;  %v251_v42 = vld [vmem:[%s903_s3 + $0x8] sm:$0xff]  ;;  %v69_v49 = vld [vmem:[#allocation2 + $0xd8] sm:$0xff] }
  0x1c   :  { %588 = vmatpush3.bf16.msra.mxu0 %v587_v20  ;;  %v250_v39 = vld [vmem:[%s903_s3] sm:$0xff]  ;;  %v614_v41 = vpack.c.bf16 %v75_v38, %v74_v37  ;;  %v51_v45 = vld [vmem:[#allocation2 + $0x48] sm:$0xff]  ;;  %v252_v51 = vld [vmem:[%s903_s3 + $0x10] sm:$0xff]  ;;  %v601_v54 = vpack.c.bf16 %v69_v49, %v68_v48 }
  0x1d   :  { %590 = vmatprep.subr.bf16.mxu0 %v589_v21  ;;  %v50_v44 = vld [vmem:[#allocation2 + $0x40] sm:$0xff]  ;;  %v98_v46 = vrot.slane %v84_v35, %v90_v26  ;;  %v99_v47 = vcombine.high %v784_v36, %v784_v36  ;;  %v618_v50 = vpack.c.bf16 %v251_v42, %v250_v39  ;;  %v253_v52 = vld [vmem:[%s903_s3 + $0x18] sm:$0xff]  ;;  %v52_v55 = vld [vmem:[#allocation2 + $0x50] sm:$0xff] }
  0x1e   :  { %616 = vmatpush3.bf16.msk.msra.mxu1 %vm777_vm3, %v614_v41  ;;  %v599_v53 = vpack.c.bf16 %v51_v45, %v50_v44  ;;  %v53_v56 = vld [vmem:[#allocation2 + $0x58] sm:$0xff]  ;;  %v70_v57 = vld [vmem:[#allocation2 + $0xe0] sm:$0xff]  ;;  %v71_v58 = vld [vmem:[#allocation2 + $0xe8] sm:$0xff]  ;;  %v621_v59 = vpack.c.bf16 %v253_v52, %v252_v51 }
  0x1f   :  { %173 = vmatprep.mubr.f32.mxu0 %v99_v47  ;;  %617 = vmatprep.subr.bf16.mxu1 %v716_v0  ;;  %v254_v60 = vld [vmem:[%s903_s3 + $0x20] sm:$0xff]  ;;  %v255_v61 = vld [vmem:[%s903_s3 + $0x28] sm:$0xff]  ;;  %v603_v62 = vpack.c.bf16 %v53_v56, %v52_v55  ;;  %v605_v63 = vpack.c.bf16 %v71_v58, %v70_v57  ;;  %v72_v4 = vld [vmem:[#allocation2 + $0xf0] sm:$0xff] }
  0x20   :  { %592 = vmatpush3.bf16.msra.mxu0 %v591_v27  ;;  %v54_v2 = vld [vmem:[#allocation2 + $0x60] sm:$0xff]  ;;  %v55_v3 = vld [vmem:[#allocation2 + $0x68] sm:$0xff]  ;;  %v73_v5 = vld [vmem:[#allocation2 + $0xf8] sm:$0xff]  ;;  %v624_v6 = vpack.c.bf16 %v255_v61, %v254_v60 }
  0x21   :  { %594 = vmatprep.subr.bf16.mxu0 %v593_v28  ;;  %525 = vmatmul.mubr.msk.f32.vlgmr.msra.gmra.mrb[0].mxu1 %vm102_vm4, %v98_v46  ;;  %v256_v7 = vld [vmem:[%s903_s3 + $0x30] sm:$0xff]  ;;  %v257_v8 = vld [vmem:[%s903_s3 + $0x38] sm:$0xff]  ;;  %v607_v9 = vpack.c.bf16 %v55_v3, %v54_v2  ;;  %v609_v10 = vpack.c.bf16 %v73_v5, %v72_v4  ;;  %v258_v14 = vld [vmem:[%s903_s3 + $0x40] sm:$0xff] }
  0x22   :  { %619 = vmatpush3.bf16.msra.mxu1 %v618_v50  ;;  %559 = vmatprep.mubr.msk.f32.mxu1 %vm717_vm0, %v718_v1  ;;  %v56_v11 = vld [vmem:[#allocation2 + $0x70] sm:$0xff]  ;;  %v57_v12 = vld [vmem:[#allocation2 + $0x78] sm:$0xff]  ;;  %v627_v13 = vpack.c.bf16 %v257_v8, %v256_v7  ;;  %v259_v15 = vld [vmem:[%s903_s3 + $0x48] sm:$0xff] }
  0x23   :  { %620 = vmatprep.subr.bf16.mxu1 %v716_v0  ;;  %v611_v16 = vpack.c.bf16 %v57_v12, %v56_v11  ;;  %v630_v17 = vpack.c.bf16 %v259_v15, %v258_v14  ;;  %v260_v18 = vld [vmem:[%s903_s3 + $0x50] sm:$0xff]  ;;  %v261_v19 = vld [vmem:[%s903_s3 + $0x58] sm:$0xff]  ;;  %v262_v21 = vld [vmem:[%s903_s3 + $0x60] sm:$0xff] }
  0x24   :  { %596 = vmatpush3.bf16.msra.mxu0 %v595_v40  ;;  %v633_v20 = vpack.c.bf16 %v261_v19, %v260_v18  ;;  %v263_v22 = vld [vmem:[%s903_s3 + $0x68] sm:$0xff]  ;;  %v264_v24 = vld [vmem:[%s903_s3 + $0x70] sm:$0xff]  ;;  %v344_v26 = vld [vmem:[%s905_s5] sm:$0xff] }
  0x25   :  { %598 = vmatprep.subr.bf16.mxu0 %v597_v43  ;;  %v636_v23 = vpack.c.bf16 %v263_v22, %v262_v21  ;;  %v345_v27 = vld [vmem:[%s905_s5 + $0x8] sm:$0xff]  ;;  %v450_v33 = vld [vmem:[%s902_s2] ss:$0 sm:$0xff]  ;;  %v346_v38 = vld [vmem:[%s905_s5 + $0x10] sm:$0xff] }
  0x26   :  { %622 = vmatpush3.bf16.msra.mxu1 %v621_v59  ;;  %v642_v28 = vpack.c.bf16 %v345_v27, %v344_v26  ;;  %v347_v39 = vld [vmem:[%s905_s5 + $0x18] sm:$0xff]  ;;  %v348_v41 = vld [vmem:[%s905_s5 + $0x20] sm:$0xff]  ;;  %v349_v42 = vld [vmem:[%s905_s5 + $0x28] sm:$0xff] }
  0x27   :  { %623 = vmatprep.subr.bf16.mxu1 %v716_v0  ;;  %v645_v40 = vpack.c.bf16 %v347_v39, %v346_v38  ;;  %v648_v43 = vpack.c.bf16 %v349_v42, %v348_v41  ;;  %v350_v44 = vld [vmem:[%s905_s5 + $0x30] sm:$0xff]  ;;  %v351_v45 = vld [vmem:[%s905_s5 + $0x38] sm:$0xff]  ;;  %v453_v47 = vld [vmem:[%s904_s4] ss:$0 sm:$0xff]  ;;  %s721_s5 = smov [#allocation5]  }
  0x28   :  { %600 = vmatpush3.bf16.msra.mxu0 %v599_v53  ;;  %v651_v46 = vpack.c.bf16 %v351_v45, %v350_v44  ;;  %v454_v52 = vld [vmem:[%s906_s6] ss:$0 sm:$0xff]  ;;  %s441_s18 = sshll.u32 %s721_s5, 4  ;;  %s442_s18 = int_to_ptr.vmem [resolvable:$true] %s441_s18 }
  0x29   :  { %602 = vmatprep.subr.bf16.mxu0 %v601_v54  ;;  %s687_s4 = scalar_lea.vmem %s442_s18, 32  ;;  %p692_p9 = scmp.lt.s32.totalorder %s442_s18, %s442_s18 }
  0x2a   :  { %625 = vmatpush3.bf16.msra.mxu1 %v624_v6  ;;  %p688_p8 = scmp.ne.s32.totalorder %s442_s18, %s687_s4  ;;  %p693_p10 = scmp.lt.s32.totalorder %s687_s4, %s687_s4 }
  0x2b   :  { %626 = vmatprep.subr.bf16.mxu1 %v716_v0 }
  0x2c   :  { %604 = vmatpush3.bf16.msra.mxu0 %v603_v62  ;;  %p694_p11 = por %p693_p10, %p692_p9 }
  0x2d   :  { %606 = vmatprep.subr.bf16.mxu0 %v605_v63 }
  0x2e   :  { %628 = vmatpush3.bf16.msra.mxu1 %v627_v13  ;;  %p695_p12 = pnand %p694_p11, %p688_p8 }
  0x2f   :  { %629 = vmatprep.subr.bf16.mxu1 %v716_v0 }
  0x30   :  { %608 = vmatpush3.bf16.msra.mxu0 %v607_v9 }
  0x31   :  { %610 = vmatprep.subr.bf16.mxu0 %v609_v10 }
  0x32   :  { %631 = vmatpush3.bf16.msra.mxu1 %v630_v17 }
  0x33   :  { %632 = vmatprep.subr.bf16.mxu1 %v716_v0 }
  0x34   :  { %612 = vmatpush3.bf16.msra.mxu0 %v611_v16 }
  0x35   :  { %641 = vmatprep.subr.bf16.mxu0 %v716_v0 }
  0x36   :  { %634 = vmatpush3.bf16.msra.mxu1 %v633_v20 }
  0x37   :  { %174 = vmatmul.mubr.f32.vlgmr.msra.gmra.mrb[0].mxu0 %v784_v36  ;;  %635 = vmatprep.subr.bf16.mxu1 %v716_v0 }
  0x38   :  { %578 = vmatprep.mubr.msk.f32.mxu0 %vm717_vm0, %v718_v1  ;;  %v265_v1 = vld [vmem:[%s903_s3 + $0x78] sm:$0xff]  ;;  %643 = vmatpush3.bf16.msra.mxu0 %v642_v28 }
  0x39   :  { %v639_v25 = vpack.c.bf16 %v265_v1, %v264_v24  ;;  %644 = vmatprep.subr.bf16.mxu0 %v716_v0 }
  0x3a   :  { %637 = vmatpush3.bf16.msra.mxu1 %v636_v23 }
  0x3b   :  { %638 = vmatprep.subr.bf16.mxu1 %v716_v0 }
  0x3c   :  { %646 = vmatpush3.bf16.msra.mxu0 %v645_v40 }
  0x3d   :  { %647 = vmatprep.subr.bf16.mxu0 %v716_v0 }
  0x3e   :  { %640 = vmatpush3.bf16.msra.mxu1 %v639_v25 }
  0x40   :  { %649 = vmatpush3.bf16.msra.mxu0 %v648_v43 }
  0x41   :  { %650 = vmatprep.subr.bf16.mxu0 %v716_v0 }
  0x44   :  { %652 = vmatpush3.bf16.msra.mxu0 %v651_v46 }
  0xf4   :  { %v245_v29 = vpop.f32.mrb[0].mxu1 }
  0xf5   :  { %v526_v30 = vpop.f32.mrb[1].mxu1 }
 0x10a   :  { %v488_v31 = vpop.f32.mrb[0].mxu0 }
 0x10b   :  { %v489_v32 = vpop.f32.mrb[1].mxu0 }
 0x10c   :  { %v490_v34 = vadd.f32 %v489_v32, %v488_v31 }
 0x10e   :  { %v176_v35 = vadd.f32 %v490_v34, %v450_v33 }
 0x110   :  { %v246_v36 = vadd.f32 %v245_v29, %v176_v35 }
 0x112   :  { %v249_v37 = vmax.f32 %v246_v36, 0.0 }
 0x114   :  { %560 = vmatmul.mubr.f32.vlgmr.msra.gmra.mrb[2].mxu1 %v249_v37 }
 0x1e7   :  { %v339_v48 = vpop.f32.mrb[2].mxu1 }
 0x1e8   :  { %v340_v49 = vadd.f32 %v453_v47, %v339_v48  ;;  %v561_v50 = vpop.f32.mrb[3].mxu1 }
 0x1ea   :  { %663 = vtanh.f32 %v340_v49 }
 0x1f4   :  { %v664_v51 = vpop.eup %663 }
 0x1f5   :  { %579 = vmatmul.mubr.msk.f32.vlgmr.msra.gmra.mrb[2].mxu0 %vm359_vm5, %v664_v51 }
 0x2c8   :  { %v429_v53 = vpop.f32.mrb[2].mxu0 }
 0x2c9   :  { %v430_v0 = vadd.f32 %v454_v52, %v429_v53  ;;  %v580_v54 = vpop.f32.mrb[3].mxu0 }
 0x2cb   :  { %434 = vst.msk [vmem:[#allocation5] sm:$0x3] %vm433_vm6, %v430_v0 }
 0x2cc   :  { %698 = shalt.err (!%p695_p12)
}
 0x2cd   :  { %s699_s20 = scalar_lea.hbm %s907_s7, 32 }
 0x2ce   :  { %p700_p13 = scmp.ne.s32.totalorder %s907_s7, %s699_s20  ;;  %p703_p0 = scmp.lt.u32.totalorder %s699_s20, %s907_s7 }
 0x2d0   :  { %p705_p1 = pnand %p703_p0, %p700_p13 }
 0x2d2   :  { %708 = shalt.err (!%p705_p1)
}
 0x2d3   :  { %444 = dma.vmem_to_hbm [thread:$0]  %s442_s18, 32, %s907_s7, [#allocation4]  }
 0x2d4   :  { %711 = dma.done.wait [#allocation4], 32  }
 0x2d5   :  { %712 = vsyncadd [#allocation4], 4294967264 }
 0x2d6   :  { %448 = vsyncpa [#allocation3], 1 }
 0x2d7   :  { %449 = vsyncpa [#allocation4], 1 }

</bundles_post_ra>
